<compile_context>
chip_gen: v7x
topology: tpu7x:2x2x1
jax: 0.10.0
libtpu: 0.0.40
codegen_flags: <defaults>
</compile_context>

<pallas_src>
import functools

import jax
import jax.numpy as jnp
from jax import lax
from jax.experimental import pallas as pl
from jax.experimental.pallas import tpu as pltpu


def _round_up(v, m):
    return (v + m - 1) // m * m


def _cell_kernel(x_ref, internal_ref, hx_ref, ax_ref, wih_ref, whh_ref, mu_ref,
                 hy_ref, ay_ref, *, sig, b, tau_a, h_real):
    # MXU matmuls: weights are in PyTorch (H, I)/(H, H) layout, contract on
    # their dim 1 (equivalent to x @ W^T) -> no transpose materialized anywhere.
    dn = (((1,), (1,)), ((), ()))
    i_input = lax.dot_general(x_ref[...], wih_ref[...], dn,
                              preferred_element_type=jnp.float32)
    h_input = lax.dot_general(hx_ref[...], whh_ref[...], dn,
                              preferred_element_type=jnp.float32)
    s = i_input + h_input                                  # (TB, H_pad), f32
    # padded lanes of s are exactly zero (weights/activations zero-padded).

    # LayerNorm: single-pass moments over the real H lanes.
    inv_h = 1.0 / float(h_real)
    sum_s = jnp.sum(s, axis=-1, keepdims=True)
    sum_sq = jnp.sum(s * s, axis=-1, keepdims=True)
    mean = sum_s * inv_h
    var = jnp.maximum(sum_sq * inv_h - mean * mean, 0.0)   # biased variance
    sigma = jnp.sqrt(var) + 1e-4
    inv_sigma = pl.reciprocal(sigma, approx=False)          # EUP, not VALU divide
    x_ln = (s - mean) * (inv_sigma * sig) + mu_ref[...].astype(jnp.float32)

    hx = hx_ref[...].astype(jnp.float32)
    ax = ax_ref[...].astype(jnp.float32)

    # adaptation state:  ay = ax*(1 - 1/tau_a) + (b/tau_a)*hx
    ay = ax * (1.0 - 1.0 / tau_a) + (b / tau_a) * hx
    # hy = ReLU(layernorm(...) + internal - ax)
    hy = jnp.maximum(x_ln + internal_ref[...].astype(jnp.float32) - ax, 0.0)

    hy_ref[...] = hy.astype(hy_ref.dtype)
    ay_ref[...] = ay.astype(ay_ref.dtype)


def adapting_layernorm_rnn_cell(x, internal, state, weight_ih, weight_hh, mu,
                                *, sig=1.0, b=0.3, tau_a=8.0, batch_tile=256):
    """JAX/Pallas equivalent of AdaptingLayerNormRNNCell.forward.

    x:         (B, input_size)
    internal:  (B, hidden_size)
    state:     (hx, ax), each (B, hidden_size)
    weight_ih: (hidden_size, input_size)   -- PyTorch layout, NOT transposed
    weight_hh: (hidden_size, hidden_size)  -- PyTorch layout, NOT transposed
    mu:        (hidden_size,) layernorm shift parameter ("bias")
    returns:   (hy, (hy, ay))

    NOTE: the ax state buffer (after padding) is donated to the ay output
    (in-place state update, matching RNN step semantics).
    """
    hx, ax = state
    B, I = x.shape
    H = hx.shape[1]

    # lane/sublane-dense padding: 128 lanes (last dim), 8 sublanes (batch tile)
    I_p = _round_up(I, 128)
    H_p = _round_up(H, 128)
    TB = min(_round_up(B, 8), max(8, (int(batch_tile) // 8) * 8))
    B_p = _round_up(B, TB)

    def pad2(a, rows, cols):
        pr, pc = rows - a.shape[0], cols - a.shape[1]
        if pr or pc:
            a = jnp.pad(a, ((0, pr), (0, pc)))
        return a

    xp = pad2(x, B_p, I_p)
    internal_p = pad2(internal, B_p, H_p)
    hx_p = pad2(hx, B_p, H_p)
    ax_p = pad2(ax, B_p, H_p)
    wih_p = pad2(weight_ih, H_p, I_p)          # stays in (H, I) layout
    whh_p = pad2(weight_hh, H_p, H_p)          # stays in (H, H) layout
    mu_p = pad2(mu.reshape(1, H), 1, H_p)

    grid = (B_p // TB,)

    # batch-blocked activations; weights/mu resident in VMEM across the grid
    def act_spec(cols):
        return pl.BlockSpec((TB, cols), lambda i: (i, 0))

    def fixed_spec(rows, cols):
        return pl.BlockSpec((rows, cols), lambda i: (0, 0))

    in_specs = [
        act_spec(I_p),            # x
        act_spec(H_p),            # internal
        act_spec(H_p),            # hx
        act_spec(H_p),            # ax
        fixed_spec(H_p, I_p),     # weight_ih
        fixed_spec(H_p, H_p),     # weight_hh
        fixed_spec(1, H_p),       # mu
    ]
    out_specs = (act_spec(H_p), act_spec(H_p))

    # rough VMEM need: resident weights + double-buffered activation tiles
    itemsize = lambda a: jnp.dtype(a.dtype).itemsize
    weight_bytes = (wih_p.size * itemsize(wih_p) + whh_p.size * itemsize(whh_p)
                    + mu_p.size * itemsize(mu_p))
    tile_bytes = 2 * (TB * I_p * itemsize(xp)
                      + 3 * TB * H_p * 4
                      + 2 * TB * H_p * 4)
    vmem_limit = min(max(32 << 20, int(1.5 * (weight_bytes + tile_bytes))),
                     64 << 20)

    flops = 2 * B_p * (I_p + H_p) * H_p
    bytes_accessed = (sum(int(a.size) * itemsize(a)
                          for a in (xp, internal_p, hx_p, ax_p,
                                    wih_p, whh_p, mu_p))
                      + B_p * H_p * (itemsize(hx_p) + itemsize(ax_p)))

    kernel = functools.partial(_cell_kernel, sig=float(sig), b=float(b),
                               tau_a=float(tau_a), h_real=int(H))

    hy_p, ay_p = pl.pallas_call(
        kernel,
        grid=grid,
        in_specs=in_specs,
        out_specs=out_specs,
        out_shape=(jax.ShapeDtypeStruct((B_p, H_p), hx_p.dtype),
                   jax.ShapeDtypeStruct((B_p, H_p), ax_p.dtype)),
        input_output_aliases={3: 1},            # ax (padded) -> ay, in place
        compiler_params=pltpu.CompilerParams(
            dimension_semantics=("parallel",),
            vmem_limit_bytes=vmem_limit),
        cost_estimate=pl.CostEstimate(flops=flops,
                                      transcendentals=2 * B_p,
                                      bytes_accessed=bytes_accessed),
    )(xp, internal_p, hx_p, ax_p, wih_p, whh_p, mu_p)

    hy = hy_p[:B, :H]
    ay = ay_p[:B, :H]
    return hy, (hy, ay)


def _reference(x, internal, state, weight_ih, weight_hh, mu,
               *, sig=1.0, b=0.3, tau_a=8.0):
    """Pure-JAX reference mirroring the PyTorch code, for validation."""
    hx, ax = state
    s = x @ weight_ih.T + hx @ weight_hh.T
    mean = jnp.mean(s, axis=-1, keepdims=True)
    sigma = jnp.sqrt(jnp.mean((s - mean) ** 2, axis=-1, keepdims=True)) + 1e-4
    x_ln = (s - mean) / sigma * sig + mu
    ay = ax * (1 - 1 / tau_a) + b / tau_a * hx
    hy = jax.nn.relu(x_ln + internal - ax)
    return hy, (hy, ay)


if __name__ == "__main__":
    key = jax.random.PRNGKey(0)
    k_x, k_int, k_hx, k_ax, k_wih, k_whh = jax.random.split(key, 6)

    batch = 2
    input_size = 16
    hidden_size = 32

    # deterministic synthetic parameters (matching torch.rand*2*rootk - rootk)
    rootk_i = (1.0 / input_size) ** 0.5
    rootk_h = (1.0 / hidden_size) ** 0.5
    weight_ih = jax.random.uniform(k_wih, (hidden_size, input_size),
                                   minval=-rootk_i, maxval=rootk_i,
                                   dtype=jnp.float32)
    weight_hh = jax.random.uniform(k_whh, (hidden_size, hidden_size),
                                   minval=-rootk_h, maxval=rootk_h,
                                   dtype=jnp.float32)
    # layernorm.mu = Parameter(zeros(hidden) + musig[0]) with musig=[0, 1]
    mu = jnp.zeros((hidden_size,), dtype=jnp.float32)

    x = jax.random.normal(k_x, (batch, input_size), dtype=jnp.float32)
    internal = jax.random.normal(k_int, (batch, hidden_size), dtype=jnp.float32)
    hx = jax.random.normal(k_hx, (batch, hidden_size), dtype=jnp.float32)
    ax = jax.random.normal(k_ax, (batch, hidden_size), dtype=jnp.float32)

    # reference first (ax padded copy is the donated buffer, originals stay valid)
    hy_ref, (_, ay_ref) = _reference(
        x, internal, (hx, ax), weight_ih, weight_hh, mu)

    hy, (hy2, ay) = adapting_layernorm_rnn_cell(
        x, internal, (hx, ax), weight_ih, weight_hh, mu)
    jax.block_until_ready((hy, hy2, ay))

    assert jnp.allclose(hy, hy_ref, atol=3e-5, rtol=3e-5), \
        float(jnp.max(jnp.abs(hy - hy_ref)))
    assert jnp.allclose(ay, ay_ref, atol=3e-5, rtol=3e-5), \
        float(jnp.max(jnp.abs(ay - ay_ref)))

    print("KERNEL_OK")
</pallas_src>

<mosaic_0001>
module attributes {stable_mosaic.version = 11 : i64} {
  func.func @_cell_kernel(%arg0: i32, %arg1: memref<8x128xf32, #tpu.memory_space<vmem>>, %arg2: memref<8x128xf32, #tpu.memory_space<vmem>>, %arg3: memref<8x128xf32, #tpu.memory_space<vmem>>, %arg4: memref<8x128xf32, #tpu.memory_space<vmem>>, %arg5: memref<128x128xf32, #tpu.memory_space<vmem>>, %arg6: memref<128x128xf32, #tpu.memory_space<vmem>>, %arg7: memref<1x128xf32, #tpu.memory_space<vmem>>, %arg8: memref<8x128xf32, #tpu.memory_space<vmem>>, %arg9: memref<8x128xf32, #tpu.memory_space<vmem>>) attributes {dimension_semantics = [#tpu.dimension_semantics<parallel>], iteration_bounds = array<i64: 1>, scalar_prefetch = 0 : i64, scratch_operands = 0 : i64, tpu.core_type = #tpu.core_type<tc>, window_params = [{transform_indices = @transform_0, window_bounds = array<i64: 8, 128>}, {transform_indices = @transform_1, window_bounds = array<i64: 8, 128>}, {transform_indices = @transform_2, window_bounds = array<i64: 8, 128>}, {transform_indices = @transform_3, window_bounds = array<i64: 8, 128>}, {pipeline_mode = #tpu.pipeline_mode<synchronous>, transform_indices = @transform_4, window_bounds = array<i64: 128, 128>}, {pipeline_mode = #tpu.pipeline_mode<synchronous>, transform_indices = @transform_5, window_bounds = array<i64: 128, 128>}, {pipeline_mode = #tpu.pipeline_mode<synchronous>, transform_indices = @transform_6, window_bounds = array<i64: 1, 128>}, {transform_indices = @transform_7, window_bounds = array<i64: 8, 128>}, {transform_indices = @transform_8, window_bounds = array<i64: 8, 128>}]} {
    %c0 = arith.constant 0 : index
    %c0_0 = arith.constant 0 : index
    %0 = vector.load %arg1[%c0, %c0_0] : memref<8x128xf32, #tpu.memory_space<vmem>>, vector<8x128xf32>
    %c0_1 = arith.constant 0 : index
    %c0_2 = arith.constant 0 : index
    %1 = vector.load %arg5[%c0_1, %c0_2] : memref<128x128xf32, #tpu.memory_space<vmem>>, vector<128x128xf32>
    %cst = arith.constant dense<0.000000e+00> : vector<8x128xf32>
    %2 = tpu.matmul %0, %1, %cst {dimension_numbers = #tpu.dot_dimension_numbers<[1], [1], [0], [0], [0, 0, 1, 0], [], []>} : vector<8x128xf32>, vector<128x128xf32>, vector<8x128xf32> -> vector<8x128xf32>
    %c0_3 = arith.constant 0 : index
    %c0_4 = arith.constant 0 : index
    %3 = vector.load %arg3[%c0_3, %c0_4] : memref<8x128xf32, #tpu.memory_space<vmem>>, vector<8x128xf32>
    %c0_5 = arith.constant 0 : index
    %c0_6 = arith.constant 0 : index
    %4 = vector.load %arg6[%c0_5, %c0_6] : memref<128x128xf32, #tpu.memory_space<vmem>>, vector<128x128xf32>
    %cst_7 = arith.constant dense<0.000000e+00> : vector<8x128xf32>
    %5 = tpu.matmul %3, %4, %cst_7 {dimension_numbers = #tpu.dot_dimension_numbers<[1], [1], [0], [0], [0, 0, 1, 0], [], []>} : vector<8x128xf32>, vector<128x128xf32>, vector<8x128xf32> -> vector<8x128xf32>
    %6 = arith.addf %2, %5 : vector<8x128xf32>
    %cst_8 = arith.constant dense<0.000000e+00> : vector<8xf32>
    %7 = vector.multi_reduction <add>, %6, %cst_8 [1] : vector<8x128xf32> to vector<8xf32>
    %8 = vector.shape_cast %7 : vector<8xf32> to vector<8x1xf32>
    %9 = arith.mulf %6, %6 : vector<8x128xf32>
    %cst_9 = arith.constant dense<0.000000e+00> : vector<8xf32>
    %10 = vector.multi_reduction <add>, %9, %cst_9 [1] : vector<8x128xf32> to vector<8xf32>
    %11 = vector.shape_cast %10 : vector<8xf32> to vector<8x1xf32>
    %cst_10 = arith.constant 3.125000e-02 : f32
    %12 = vector.broadcast %cst_10 : f32 to vector<8x1xf32>
    %13 = arith.mulf %8, %12 : vector<8x1xf32>
    %cst_11 = arith.constant 3.125000e-02 : f32
    %14 = vector.broadcast %cst_11 : f32 to vector<8x1xf32>
    %15 = arith.mulf %11, %14 : vector<8x1xf32>
    %16 = arith.mulf %13, %13 : vector<8x1xf32>
    %17 = arith.subf %15, %16 : vector<8x1xf32>
    %cst_12 = arith.constant 0.000000e+00 : f32
    %18 = vector.broadcast %cst_12 : f32 to vector<8x1xf32>
    %19 = arith.maximumf %17, %18 : vector<8x1xf32>
    %20 = math.sqrt %19 : vector<8x1xf32>
    %cst_13 = arith.constant 9.99999974E-5 : f32
    %21 = vector.broadcast %cst_13 : f32 to vector<8x1xf32>
    %22 = arith.addf %20, %21 : vector<8x1xf32>
    %23 = tpu.reciprocal %22 : vector<8x1xf32> -> vector<8x1xf32>
    %24 = vector.broadcast %13 : vector<8x1xf32> to vector<8x128xf32>
    %25 = arith.subf %6, %24 : vector<8x128xf32>
    %cst_14 = arith.constant 1.000000e+00 : f32
    %26 = vector.broadcast %cst_14 : f32 to vector<8x1xf32>
    %27 = arith.mulf %23, %26 : vector<8x1xf32>
    %28 = vector.broadcast %27 : vector<8x1xf32> to vector<8x128xf32>
    %29 = arith.mulf %25, %28 : vector<8x128xf32>
    %c0_15 = arith.constant 0 : index
    %c0_16 = arith.constant 0 : index
    %30 = vector.load %arg7[%c0_15, %c0_16] : memref<1x128xf32, #tpu.memory_space<vmem>>, vector<1x128xf32>
    %31 = vector.broadcast %30 : vector<1x128xf32> to vector<8x128xf32>
    %32 = arith.addf %29, %31 : vector<8x128xf32>
    %c0_17 = arith.constant 0 : index
    %c0_18 = arith.constant 0 : index
    %33 = vector.load %arg3[%c0_17, %c0_18] : memref<8x128xf32, #tpu.memory_space<vmem>>, vector<8x128xf32>
    %c0_19 = arith.constant 0 : index
    %c0_20 = arith.constant 0 : index
    %34 = vector.load %arg4[%c0_19, %c0_20] : memref<8x128xf32, #tpu.memory_space<vmem>>, vector<8x128xf32>
    %cst_21 = arith.constant 8.750000e-01 : f32
    %35 = vector.broadcast %cst_21 : f32 to vector<8x128xf32>
    %36 = arith.mulf %34, %35 : vector<8x128xf32>
    %cst_22 = arith.constant 3.750000e-02 : f32
    %37 = vector.broadcast %cst_22 : f32 to vector<8x128xf32>
    %38 = arith.mulf %37, %33 : vector<8x128xf32>
    %39 = arith.addf %36, %38 : vector<8x128xf32>
    %c0_23 = arith.constant 0 : index
    %c0_24 = arith.constant 0 : index
    %40 = vector.load %arg2[%c0_23, %c0_24] : memref<8x128xf32, #tpu.memory_space<vmem>>, vector<8x128xf32>
    %41 = arith.addf %32, %40 : vector<8x128xf32>
    %42 = arith.subf %41, %34 : vector<8x128xf32>
    %cst_25 = arith.constant 0.000000e+00 : f32
    %43 = vector.broadcast %cst_25 : f32 to vector<8x128xf32>
    %44 = arith.maximumf %42, %43 : vector<8x128xf32>
    %c0_26 = arith.constant 0 : index
    %c0_27 = arith.constant 0 : index
    %45 = vector.load %arg8[%c0_26, %c0_27] : memref<8x128xf32, #tpu.memory_space<vmem>>, vector<8x128xf32>
    tpu.vector_store %arg8[%c0_26, %c0_27], %44 {strides = array<i32>} : memref<8x128xf32, #tpu.memory_space<vmem>>, vector<8x128xf32>,
    %c0_28 = arith.constant 0 : index
    %c0_29 = arith.constant 0 : index
    %46 = vector.load %arg9[%c0_28, %c0_29] : memref<8x128xf32, #tpu.memory_space<vmem>>, vector<8x128xf32>
    tpu.vector_store %arg9[%c0_28, %c0_29], %39 {strides = array<i32>} : memref<8x128xf32, #tpu.memory_space<vmem>>, vector<8x128xf32>,
    return
  }
  func.func @transform_0(%arg0: i32) -> (i32, i32) {
    %c0_i32 = arith.constant 0 : i32
    %c0_i32_0 = arith.constant 0 : i32
    return %arg0, %c0_i32 : i32, i32
  }
  func.func @transform_1(%arg0: i32) -> (i32, i32) {
    %c0_i32 = arith.constant 0 : i32
    %c0_i32_0 = arith.constant 0 : i32
    return %arg0, %c0_i32 : i32, i32
  }
  func.func @transform_2(%arg0: i32) -> (i32, i32) {
    %c0_i32 = arith.constant 0 : i32
    %c0_i32_0 = arith.constant 0 : i32
    return %arg0, %c0_i32 : i32, i32
  }
  func.func @transform_3(%arg0: i32) -> (i32, i32) {
    %c0_i32 = arith.constant 0 : i32
    %c0_i32_0 = arith.constant 0 : i32
    return %arg0, %c0_i32 : i32, i32
  }
  func.func @transform_4(%arg0: i32) -> (i32, i32) {
    %c0_i32 = arith.constant 0 : i32
    %c0_i32_0 = arith.constant 0 : i32
    %c0_i32_1 = arith.constant 0 : i32
    return %c0_i32, %c0_i32_0 : i32, i32
  }
  func.func @transform_5(%arg0: i32) -> (i32, i32) {
    %c0_i32 = arith.constant 0 : i32
    %c0_i32_0 = arith.constant 0 : i32
    %c0_i32_1 = arith.constant 0 : i32
    return %c0_i32, %c0_i32_0 : i32, i32
  }
  func.func @transform_6(%arg0: i32) -> (i32, i32) {
    %c0_i32 = arith.constant 0 : i32
    %c0_i32_0 = arith.constant 0 : i32
    %c0_i32_1 = arith.constant 0 : i32
    return %c0_i32, %c0_i32_0 : i32, i32
  }
  func.func @transform_7(%arg0: i32) -> (i32, i32) {
    %c0_i32 = arith.constant 0 : i32
    %c0_i32_0 = arith.constant 0 : i32
    return %arg0, %c0_i32 : i32, i32
  }
  func.func @transform_8(%arg0: i32) -> (i32, i32) {
    %c0_i32 = arith.constant 0 : i32
    %c0_i32_0 = arith.constant 0 : i32
    return %arg0, %c0_i32 : i32, i32
  }
}

</mosaic_0001>

<bundles_post_ra>
// kernel: tpu_custom_call.1
= control target key start
LH: loop header
LB: loop body
LE: loop exit
PB: predicated region body
PF: predicated region fallthrough
CT: control target
= control target key end

     0   :  { %14 = vsyncpa [#allocation3], 0  ;;  %s795_s0 = inlined_call_operand.vmem [shape: f32[8,128], index: 0, kind: input, shape index: {}]   ;;  %s796_s1 = inlined_call_operand.vmem [shape: f32[8,128], index: 1, kind: input, shape index: {}]   ;;  %s797_s2 = inlined_call_operand.vmem [shape: f32[8,128], index: 2, kind: input, shape index: {}]   ;;  %s798_s3 = inlined_call_operand.hbm [shape: f32[8,128], index: 3, kind: input, shape index: {}, may-alias: {3,8}]   ;;  %s799_s4 = inlined_call_operand.hbm [shape: f32[128,128], index: 4, kind: input, shape index: {}]   ;;  %s800_s5 = inlined_call_operand.hbm [shape: f32[128,128], index: 5, kind: input, shape index: {}]   ;;  %s801_s6 = inlined_call_operand.hbm [shape: f32[1,128], index: 6, kind: input, shape index: {}]   ;;  %s802_s7 = inlined_call_operand.hbm [shape: f32[8,128], index: 7, kind: output, shape index: {0}]   ;;  %s803_s8 = inlined_call_operand.hbm [shape: f32[8,128], index: 8, kind: output, shape index: {1}, may-alias: {3,8}]  }
   0x1   :  { %15 = vsyncpa [#allocation6], 0 }
   0x2   :  { %16 = vsyncpa [#allocation9], 0 }
   0x3   :  { %17 = vsyncpa [#allocation4], 0 }
   0x4   :  { %18 = vsyncpa [#allocation12], 0  ;;  %s636_s27 = smov [#allocation5]   ;;  %s494_s9 = scalar_lea.hbm %s799_s4, 2048 }
   0x5   :  { %s40_s28 = sshll.u32 %s636_s27, 4  ;;  %p495_p0 = scmp.ne.s32.totalorder %s799_s4, %s494_s9  ;;  %s41_s28 = int_to_ptr.vmem [resolvable:$true] %s40_s28 }
   0x6   :  { %p498_p1 = scmp.lt.u32.totalorder %s494_s9, %s799_s4 }
   0x8   :  { %p500_p2 = pnand %p498_p1, %p495_p0 }
   0xa   :  { %503 = shalt.err (!%p500_p2)
}
   0xb   :  { %s504_s14 = scalar_lea.vmem %s41_s28, 2048  ;;  %p509_p4 = scmp.lt.s32.totalorder %s41_s28, %s41_s28 }
   0xc   :  { %p505_p3 = scmp.ne.s32.totalorder %s41_s28, %s504_s14  ;;  %p510_p5 = scmp.lt.s32.totalorder %s504_s14, %s504_s14 }
   0xe   :  { %p511_p6 = por %p510_p5, %p509_p4 }
  0x10   :  { %p512_p7 = pnand %p511_p6, %p505_p3 }
  0x12   :  { %515 = shalt.err (!%p512_p7)
}
  0x13   :  { %s637_s15 = smov 128   ;;  %s638_s16 = smov 8  }
  0x14   :  { %46 = dma.hbm_to_vmem [thread:$0]  %s799_s4, 2048, %s41_s28, [#allocation6], %s637_s15, %s637_s15, %s638_s16  }
  0x15   :  { %s639_s19 = smov [#allocation2]   ;;  %s640_s21 = smov [#allocation7]  }
  0x16   :  { %s31_s20 = sshll.u32 %s639_s19, 4  ;;  %s52_s22 = sshll.u32 %s640_s21, 4  ;;  %s32_s20 = int_to_ptr.vmem [resolvable:$true] %s31_s20  ;;  %s53_s22 = int_to_ptr.vmem [resolvable:$true] %s52_s22 }
  0x17   :  { %s516_s25 = scalar_lea.hbm %s798_s3, 128 }
  0x18   :  { %p517_p8 = scmp.ne.s32.totalorder %s798_s3, %s516_s25  ;;  %p520_p9 = scmp.lt.u32.totalorder %s516_s25, %s798_s3 }
  0x1a   :  { %p522_p10 = pnand %p520_p9, %p517_p8 }
  0x1c   :  { %525 = shalt.err (!%p522_p10)
}
  0x1d   :  { %s526_s4 = scalar_lea.vmem %s32_s20, 128  ;;  %p531_p12 = scmp.lt.s32.totalorder %s32_s20, %s32_s20 }
  0x1e   :  { %p527_p11 = scmp.ne.s32.totalorder %s32_s20, %s526_s4  ;;  %p532_p13 = scmp.lt.s32.totalorder %s526_s4, %s526_s4 }
  0x20   :  { %p533_p0 = por %p532_p13, %p531_p12 }
  0x22   :  { %p534_p1 = pnand %p533_p0, %p527_p11 }
  0x24   :  { %537 = shalt.err (!%p534_p1)
}
  0x25   :  { %34 = dma.hbm_to_vmem [thread:$0]  %s798_s3, 128, %s32_s20, [#allocation3]  }
  0x26   :  { %s538_s12 = scalar_lea.hbm %s800_s5, 2048 }
  0x27   :  { %p539_p2 = scmp.ne.s32.totalorder %s800_s5, %s538_s12  ;;  %p542_p3 = scmp.lt.u32.totalorder %s538_s12, %s800_s5 }
  0x29   :  { %p544_p4 = pnand %p542_p3, %p539_p2 }
  0x2b   :  { %547 = shalt.err (!%p544_p4)
}
  0x2c   :  { %s548_s19 = scalar_lea.vmem %s53_s22, 2048  ;;  %p553_p6 = scmp.lt.s32.totalorder %s53_s22, %s53_s22 }
  0x2d   :  { %p549_p5 = scmp.ne.s32.totalorder %s53_s22, %s548_s19  ;;  %p554_p7 = scmp.lt.s32.totalorder %s548_s19, %s548_s19 }
  0x2f   :  { %p555_p8 = por %p554_p7, %p553_p6 }
  0x31   :  { %p556_p9 = pnand %p555_p8, %p549_p5 }
  0x33   :  { %559 = shalt.err (!%p556_p9)
}
  0x34   :  { %58 = dma.hbm_to_vmem [thread:$0]  %s800_s5, 2048, %s53_s22, [#allocation6], %s637_s15, %s637_s15, %s638_s16  }
  0x35   :  { %s641_s21 = smov [#allocation8]   ;;  %s560_s26 = scalar_lea.hbm %s801_s6, 16 }
  0x36   :  { %s65_s23 = sshll.u32 %s641_s21, 4  ;;  %p561_p10 = scmp.ne.s32.totalorder %s801_s6, %s560_s26  ;;  %s66_s23 = int_to_ptr.vmem [resolvable:$true] %s65_s23 }
  0x37   :  { %p564_p11 = scmp.lt.u32.totalorder %s560_s26, %s801_s6 }
  0x39   :  { %p566_p12 = pnand %p564_p11, %p561_p10 }
  0x3b   :  { %569 = shalt.err (!%p566_p12)
}
  0x3c   :  { %s570_s28 = scalar_lea.vmem %s66_s23, 16  ;;  %s574_s5 = scalar_lea.vmem %s66_s23, 32 }
  0x3d   :  { %p571_p13 = scmp.ne.s32.totalorder %s66_s23, %s570_s28  ;;  %p575_p0 = scmp.lt.s32.totalorder %s66_s23, %s66_s23 }
  0x3e   :  { %p576_p1 = scmp.lt.s32.totalorder %s574_s5, %s570_s28 }
  0x40   :  { %p577_p2 = por %p576_p1, %p575_p0 }
  0x42   :  { %p578_p3 = pnand %p577_p2, %p571_p13 }
  0x44   :  { %581 = shalt.err (!%p578_p3)
}
  0x45   :  { %68 = dma.hbm_to_vmem [thread:$0]  %s801_s6, 16, %s66_s23, [#allocation9]  }
  0x46   :  { %626 = dma.done.wait [#allocation3], 128  }
  0x47   :  { %627 = vsyncadd [#allocation3], 4294967168 }
  0x48   :  { %628 = dma.done.wait [#allocation6], 4096  }
  0x49   :  { %629 = vsyncadd [#allocation6], 4294963200 }
  0x4a   :  { %630 = dma.done.wait [#allocation9], 16  }
  0x4b   :  { %631 = vsyncadd [#allocation9], 4294967280  ;;  %v642_v0 = vmov 0.0|0.0   ;;  %vm643_vm0 = vmmov 0   ;;  %v644_v1 = vmov 0.0   ;;  %v99_v2 = vld [vmem:[#allocation7] sm:$0xff] }
  0x4c   :  { %430 = vmatprep.subr.bf16.mxu1 %v642_v0  ;;  %454 = vmatprep.subr.bf16.mxu0 %v642_v0  ;;  %v100_v3 = vld [vmem:[#allocation7 + $0x8] sm:$0xff]  ;;  %v82_v4 = vld [vmem:[#allocation5] sm:$0xff]  ;;  %v101_v8 = vld [vmem:[#allocation7 + $0x10] sm:$0xff]  ;;  %s645_s11 = smov [#allocation11]  }
  0x4d   :  { %392 = vmatprep.mubr.msk.f32.mxu1 %vm643_vm0, %v644_v1  ;;  %427 = vmatprep.mubr.msk.f32.mxu0 %vm643_vm0, %v644_v1  ;;  %v431_v5 = vpack.c.bf16 %v100_v3, %v99_v2  ;;  %v83_v6 = vld [vmem:[#allocation5 + $0x8] sm:$0xff]  ;;  %v102_v9 = vld [vmem:[#allocation7 + $0x18] sm:$0xff]  ;;  %v84_v10 = vld [vmem:[#allocation5 + $0x10] sm:$0xff] }
  0x4e   :  { %v455_v7 = vpack.c.bf16 %v83_v6, %v82_v4  ;;  %v85_v11 = vld [vmem:[#allocation5 + $0x18] sm:$0xff]  ;;  %v434_v12 = vpack.c.bf16 %v102_v9, %v101_v8  ;;  %v103_v14 = vld [vmem:[#allocation7 + $0x20] sm:$0xff]  ;;  %v104_v15 = vld [vmem:[#allocation7 + $0x28] sm:$0xff] }
  0x4f   :  { %432 = vmatpush3.bf16.xpose.msra.mxu1 %v431_v5  ;;  %v458_v13 = vpack.c.bf16 %v85_v11, %v84_v10  ;;  %v86_v16 = vld [vmem:[#allocation5 + $0x20] sm:$0xff]  ;;  %v87_v17 = vld [vmem:[#allocation5 + $0x28] sm:$0xff]  ;;  %v437_v18 = vpack.c.bf16 %v104_v15, %v103_v14  ;;  %v105_v20 = vld [vmem:[#allocation7 + $0x30] sm:$0xff] }
  0x50   :  { %456 = vmatpush3.bf16.xpose.msra.mxu0 %v455_v7  ;;  %433 = vmatprep.subr.bf16.mxu1 %v642_v0  ;;  %v461_v19 = vpack.c.bf16 %v87_v17, %v86_v16  ;;  %v106_v21 = vld [vmem:[#allocation7 + $0x38] sm:$0xff]  ;;  %v88_v22 = vld [vmem:[#allocation5 + $0x30] sm:$0xff]  ;;  %v107_v26 = vld [vmem:[#allocation7 + $0x40] sm:$0xff] }
  0x51   :  { %457 = vmatprep.subr.bf16.mxu0 %v642_v0  ;;  %v89_v23 = vld [vmem:[#allocation5 + $0x38] sm:$0xff]  ;;  %v440_v24 = vpack.c.bf16 %v106_v21, %v105_v20  ;;  %v108_v27 = vld [vmem:[#allocation7 + $0x48] sm:$0xff]  ;;  %v90_v28 = vld [vmem:[#allocation5 + $0x40] sm:$0xff] }
  0x52   :  { %v464_v25 = vpack.c.bf16 %v89_v23, %v88_v22  ;;  %v91_v29 = vld [vmem:[#allocation5 + $0x48] sm:$0xff]  ;;  %v443_v30 = vpack.c.bf16 %v108_v27, %v107_v26  ;;  %v109_v32 = vld [vmem:[#allocation7 + $0x50] sm:$0xff]  ;;  %v110_v33 = vld [vmem:[#allocation7 + $0x58] sm:$0xff] }
  0x53   :  { %v467_v31 = vpack.c.bf16 %v91_v29, %v90_v28  ;;  %v92_v34 = vld [vmem:[#allocation5 + $0x50] sm:$0xff]  ;;  %v93_v35 = vld [vmem:[#allocation5 + $0x58] sm:$0xff]  ;;  %v446_v36 = vpack.c.bf16 %v110_v33, %v109_v32  ;;  %v111_v38 = vld [vmem:[#allocation7 + $0x60] sm:$0xff] }
  0x54   :  { %v470_v37 = vpack.c.bf16 %v93_v35, %v92_v34  ;;  %v112_v39 = vld [vmem:[#allocation7 + $0x68] sm:$0xff]  ;;  %v94_v40 = vld [vmem:[#allocation5 + $0x60] sm:$0xff]  ;;  %v113_v44 = vld [vmem:[#allocation7 + $0x70] sm:$0xff] }
  0x55   :  { %v95_v41 = vld [vmem:[#allocation5 + $0x68] sm:$0xff]  ;;  %v449_v42 = vpack.c.bf16 %v112_v39, %v111_v38  ;;  %v114_v45 = vld [vmem:[#allocation7 + $0x78] sm:$0xff]  ;;  %v96_v46 = vld [vmem:[#allocation5 + $0x70] sm:$0xff] }
  0x56   :  { %v473_v43 = vpack.c.bf16 %v95_v41, %v94_v40  ;;  %v97_v47 = vld [vmem:[#allocation5 + $0x78] sm:$0xff]  ;;  %v452_v48 = vpack.c.bf16 %v114_v45, %v113_v44 }
  0x57   :  { %435 = vmatpush3.bf16.xpose.msra.mxu1 %v434_v12  ;;  %v476_v49 = vpack.c.bf16 %v97_v47, %v96_v46  ;;  %v98_v50 = vld [vmem:[%s797_s2] sm:$0xff]  ;;  %s310_s2 = sshll.u32 %s645_s11, 4  ;;  %s311_s2 = int_to_ptr.vmem [resolvable:$true] %s310_s2 }
  0x58   :  { %459 = vmatpush3.bf16.xpose.msra.mxu0 %v458_v13  ;;  %436 = vmatprep.subr.bf16.mxu1 %v642_v0  ;;  %v81_v51 = vld [vmem:[%s795_s0] sm:$0xff]  ;;  %v286_v59 = vmul.f32 0.0375, %v98_v50  ;;  %s582_s12 = scalar_lea.vmem %s311_s2, 128  ;;  %p587_p5 = scmp.lt.s32.totalorder %s311_s2, %s311_s2 }
  0x59   :  { %460 = vmatprep.subr.bf16.mxu0 %v642_v0  ;;  %v284_v58 = vld [vmem:[#allocation2] sm:$0xff]  ;;  %p583_p4 = scmp.ne.s32.totalorder %s311_s2, %s582_s12  ;;  %p588_p6 = scmp.lt.s32.totalorder %s582_s12, %s582_s12 }
  0x5a   :  { %v285_v60 = vmul.f32 0.875, %v284_v58 }
  0x5b   :  { %p589_p7 = por %p588_p6, %p587_p5 }
  0x5c   :  { %v287_v61 = vadd.f32 %v286_v59, %v285_v60 }
  0x5d   :  { %p590_p8 = pnand %p589_p7, %p583_p4 }
  0x5e   :  { %293 = vst [vmem:[#allocation11] sm:$0xff] %v287_v61 }
  0x5f   :  { %438 = vmatpush3.bf16.xpose.msra.mxu1 %v437_v18 }
  0x60   :  { %462 = vmatpush3.bf16.xpose.msra.mxu0 %v461_v19  ;;  %439 = vmatprep.subr.bf16.mxu1 %v642_v0 }
  0x61   :  { %463 = vmatprep.subr.bf16.mxu0 %v642_v0 }
  0x67   :  { %441 = vmatpush3.bf16.xpose.msra.mxu1 %v440_v24 }
  0x68   :  { %465 = vmatpush3.bf16.xpose.msra.mxu0 %v464_v25  ;;  %442 = vmatprep.subr.bf16.mxu1 %v642_v0 }
  0x69   :  { %466 = vmatprep.subr.bf16.mxu0 %v642_v0 }
  0x6f   :  { %444 = vmatpush3.bf16.xpose.msra.mxu1 %v443_v30 }
  0x70   :  { %468 = vmatpush3.bf16.xpose.msra.mxu0 %v467_v31  ;;  %445 = vmatprep.subr.bf16.mxu1 %v642_v0 }
  0x71   :  { %469 = vmatprep.subr.bf16.mxu0 %v642_v0 }
  0x77   :  { %447 = vmatpush3.bf16.xpose.msra.mxu1 %v446_v36 }
  0x78   :  { %471 = vmatpush3.bf16.xpose.msra.mxu0 %v470_v37  ;;  %448 = vmatprep.subr.bf16.mxu1 %v642_v0 }
  0x79   :  { %472 = vmatprep.subr.bf16.mxu0 %v642_v0 }
  0x7f   :  { %450 = vmatpush3.bf16.xpose.msra.mxu1 %v449_v42 }
  0x80   :  { %474 = vmatpush3.bf16.xpose.msra.mxu0 %v473_v43  ;;  %451 = vmatprep.subr.bf16.mxu1 %v642_v0 }
  0x81   :  { %475 = vmatprep.subr.bf16.mxu0 %v642_v0 }
  0x87   :  { %453 = vmatpush3.bf16.xpose.msra.mxu1 %v452_v48 }
  0x88   :  { %477 = vmatpush3.bf16.xpose.msra.mxu0 %v476_v49 }
  0x8e   :  { %393 = vmatmul.mubr.f32.vlgmr.msra.gmra.mrb[0].mxu1 %v98_v50 }
  0x8f   :  { %428 = vmatmul.mubr.f32.vlgmr.msra.gmra.mrb[0].mxu0 %v81_v51 }
 0x161   :  { %v181_v52 = vpop.f32.mrb[0].mxu1 }
 0x162   :  { %v251_v53 = vpop.f32.mrb[0].mxu0  ;;  %v394_v54 = vpop.f32.mrb[1].mxu1 }
 0x163   :  { %v252_v55 = vadd.f32 %v251_v53, %v181_v52  ;;  %v429_v56 = vpop.f32.mrb[1].mxu0 }
 0x165   :  { %255 = vadd.xlane.f32.xlu0 %v252_v55  ;;  %v257_v57 = vmul.f32 %v252_v55, %v252_v55 }
 0x169   :  { %258 = vadd.xlane.f32.xlu0 %v257_v57 }
 0x16a   :  { %593 = shalt.err (!%p590_p8)
}
 0x16b   :  { %s594_s14 = scalar_lea.hbm %s803_s8, 128 }
 0x16c   :  { %p595_p9 = scmp.ne.s32.totalorder %s803_s8, %s594_s14  ;;  %p598_p10 = scmp.lt.u32.totalorder %s594_s14, %s803_s8 }
 0x16e   :  { %p600_p11 = pnand %p598_p10, %p595_p9 }
 0x170   :  { %603 = shalt.err (!%p600_p11)
}
 0x171   :  { %313 = dma.vmem_to_hbm [thread:$0]  %s311_s2, 128, %s803_s8, [#allocation12]   ;;  %v325_v13 = vld [vmem:[#allocation8] ss:$0 sm:$0xff]  ;;  %v288_v15 = vld [vmem:[%s796_s1] sm:$0xff] }
 0x172   :  { %s646_s24 = smov [#allocation10]  }
 0x173   :  { %s300_s25 = sshll.u32 %s646_s24, 4  ;;  %s301_s25 = int_to_ptr.vmem [resolvable:$true] %s300_s25 }
 0x174   :  { %s604_s26 = scalar_lea.vmem %s301_s25, 128  ;;  %p609_p13 = scmp.lt.s32.totalorder %s301_s25, %s301_s25 }
 0x175   :  { %p605_p12 = scmp.ne.s32.totalorder %s301_s25, %s604_s26  ;;  %p610_p0 = scmp.lt.s32.totalorder %s604_s26, %s604_s26 }
 0x177   :  { %p611_p1 = por %p610_p0, %p609_p13 }
 0x179   :  { %p612_p2 = pnand %p611_p1, %p605_p12 }
 0x1f2   :  { %v256_v62 = vpop.xlane.xlu0 %255 }
 0x1f3   :  { %v260_v63 = vmul.f32 0.03125, %v256_v62 }
 0x1f5   :  { %v262_v1 = vmul.f32 %v260_v63, %v260_v63  ;;  %v274_v11 = vsub.f32 %v252_v55, %v260_v63 }
 0x1f6   :  { %v259_v0 = vpop.xlane.xlu0 %258 }
 0x1f7   :  { %v261_v2 = vmul.f32 0.03125, %v259_v0 }
 0x1f9   :  { %v263_v3 = vsub.f32 %v261_v2, %v262_v1 }
 0x1fb   :  { %v264_v4 = vmax.f32 %v263_v3, 0.0 }
 0x1fd   :  { %490 = vrsqrt.f32 %v264_v4  ;;  %vm267_vm1 = vcmp.eq.f32.partialorder %v264_v4, inf  ;;  %v270_v7 = vand.u32 2147483648, %v264_v4  ;;  %vm269_vm2 = vcmp.eq.f32.partialorder %v264_v4, 0.0 }
 0x207   :  { %v491_v5 = vpop.eup %490 }
 0x208   :  { %v266_v6 = vmul.f32 %v491_v5, %v264_v4 }
 0x20a   :  { %v268_v8 = vsel %vm267_vm1, %v264_v4, %v266_v6 }
 0x20b   :  { %v271_v9 = vsel %vm269_vm2, %v270_v7, %v268_v8 }
 0x20c   :  { %v272_v10 = vadd.f32 0.0001, %v271_v9 }
 0x20e   :  { %492 = vrcp.f32 %v272_v10 }
 0x218   :  { %v493_v12 = vpop.eup %492 }
 0x219   :  { %v275_v14 = vmul.f32 %v493_v12, %v274_v11 }
 0x21b   :  { %v283_v16 = vadd.f32 %v325_v13, %v275_v14 }
 0x21d   :  { %v289_v17 = vadd.f32 %v288_v15, %v283_v16 }
 0x21f   :  { %v290_v18 = vsub.f32 %v289_v17, %v284_v58 }
 0x221   :  { %v291_v19 = vmax.f32 %v290_v18, 0.0 }
 0x223   :  { %292 = vst [vmem:[#allocation10] sm:$0xff] %v291_v19 }
 0x224   :  { %615 = shalt.err (!%p612_p2)
}
 0x225   :  { %s616_s30 = scalar_lea.hbm %s802_s7, 128 }
 0x226   :  { %p617_p3 = scmp.ne.s32.totalorder %s802_s7, %s616_s30  ;;  %p620_p4 = scmp.lt.u32.totalorder %s616_s30, %s802_s7 }
 0x228   :  { %p622_p5 = pnand %p620_p4, %p617_p3 }
 0x22a   :  { %625 = shalt.err (!%p622_p5)
}
 0x22b   :  { %303 = dma.vmem_to_hbm [thread:$0]  %s301_s25, 128, %s802_s7, [#allocation4]  }
 0x22c   :  { %632 = dma.done.wait [#allocation4], 128  }
 0x22d   :  { %633 = vsyncadd [#allocation4], 4294967168 }
 0x22e   :  { %634 = dma.done.wait [#allocation12], 128  }
 0x22f   :  { %635 = vsyncadd [#allocation12], 4294967168 }
 0x230   :  { %320 = vsyncpa [#allocation3], 1 }
 0x231   :  { %321 = vsyncpa [#allocation6], 1 }
 0x232   :  { %322 = vsyncpa [#allocation9], 1 }
 0x233   :  { %323 = vsyncpa [#allocation4], 1 }
 0x234   :  { %324 = vsyncpa [#allocation12], 1 }

</bundles_post_ra>
